<compile_context>
chip_gen: v7x
topology: tpu7x:2x2x1
jax: 0.10.0
libtpu: 0.0.40
codegen_flags: <defaults>
</compile_context>

<pallas_src>
import functools

import jax
import jax.numpy as jnp
from jax.experimental import pallas as pl
from jax.experimental.pallas import tpu as pltpu


def _asp_kernel(h_ref, w1t_ref, b1_ref, w2t_ref, o_ref, *,
                score_dtype, approx_recip):
    tb, d, t = h_ref.shape            # (TB, D, T), native PyTorch layout
    hd = w1t_ref.shape[0]
    nh = w2t_ref.shape[0]

    hb = h_ref[...].astype(jnp.float32)                       # (TB, D, T)

    # ---- score path: Linear(D,Hd) + ReLU + Linear(Hd,NH) in native layout ---
    # Broadcasting the small weights over the batch tile turns both matmuls
    # into plain batched 'bij,bjk->bik' MXU calls; no XLU transpose of h.
    w1b = jnp.broadcast_to(w1t_ref[...].astype(score_dtype)[None], (tb, hd, d))
    hid = jnp.einsum('bhd,bdt->bht', w1b, hb.astype(score_dtype),
                     preferred_element_type=jnp.float32)       # (TB, Hd, T)
    hid = jnp.maximum(hid + b1_ref[...], 0.0)                  # bias (Hd,1) bcast

    w2b = jnp.broadcast_to(w2t_ref[...].astype(score_dtype)[None], (tb, nh, hd))
    scores = jnp.einsum('bnh,bht->bnt', w2b, hid.astype(score_dtype),
                        preferred_element_type=jnp.float32)    # (TB, NH, T)

    # ---- softmax over time (lane-axis reductions) ---------------------------
    m = jnp.max(scores, axis=-1, keepdims=True)                # (TB, NH, 1)
    e = jnp.exp(scores - m)                                    # (TB, NH, T)
    inv_s = pl.reciprocal(jnp.sum(e, axis=-1, keepdims=True),
                          approx=approx_recip)                 # (TB, NH, 1)

    # ---- fused first + second weighted moments (one batched MXU call) -------
    # Kept in f32: E[x^2]-mu^2 is cancellation sensitive.
    hcat = jnp.concatenate([hb, hb * hb], axis=1)              # (TB, 2D, T)
    mom = jnp.einsum('bnt,bkt->bnk', e, hcat,
                     preferred_element_type=jnp.float32)       # (TB, NH, 2D)
    mom = mom * inv_s                                          # fold softmax norm
    mu = mom[:, :, :d]                                         # (TB, NH, D)
    ex2 = mom[:, :, d:]
    var = jnp.maximum(ex2 - mu * mu, 0.0)                      # guard cancellation
    sig = jnp.sqrt(var + 1e-5)

    # ---- PyTorch-ordered lane-dense output: [mu_0, sig_0, mu_1, sig_1, ...] -
    for n in range(nh):                                        # static unroll
        o_ref[:, (2 * n) * d:(2 * n + 1) * d] = mu[:, n, :]
        o_ref[:, (2 * n + 1) * d:(2 * n + 2) * d] = sig[:, n, :]


def _pick_tb(B, per_tb_bytes, budget_bytes):
    """Largest divisor of B that fits the VMEM budget, keeps the block layout
    legal (tb % 8 == 0 or tb == B), and prefers grid >= 2 (megacore)."""
    divs = [d for d in range(1, B + 1) if B % d == 0]
    valid = [d for d in divs if (d % 8 == 0) or (d == B)] or [B]
    fitting = [d for d in valid if d * per_tb_bytes <= budget_bytes] or [min(valid)]
    multi = [d for d in fitting if B // d >= 2]
    return max(multi) if multi else max(fitting)


def atten_stats_pooling(h, w1, b1, w2, *, use_bf16_scores=False, tb=None):
    """h: (B, in_dim, T).  w1: (in_dim, hid_dim), b1: (hid_dim,),
    w2: (hid_dim, n_heads).  Returns (B, 2*in_dim*n_heads) f32 in PyTorch order."""
    B, D, T = h.shape
    Hd = w1.shape[1]
    NH = w2.shape[1]

    # Per-generation VMEM budget (v7x: 64 MiB physical per TC; v5e/v6e: 128 MiB).
    try:
        vmem_cap = int(pltpu.get_tpu_info().vmem_capacity_bytes)
    except Exception:
        vmem_cap = 64 * 1024 * 1024        # conservative fallback (v7x per-TC)
    budget = (vmem_cap * 3) // 4           # ~48 MiB on v7x, ~96 MiB on v5e/v6e
    vmem_limit = max(32 * 1024 * 1024,
                     min(int(vmem_cap * 0.9), 112 * 1024 * 1024))

    # Rough per-unit-tb working-set model (bytes).
    sdt = 2 if use_bf16_scores else 4
    per_tb = (
        2 * D * T * h.dtype.itemsize       # double-buffered h input block
        + 2 * D * T * 4                    # hcat = [h, h*h] (f32) for fused moments
        + (D * T + Hd * D) * sdt           # score-path casts + broadcast w1
        + (Hd * T + 3 * NH * T) * 4        # hid, scores, exp
        + 2 * 2 * NH * D * 4               # double-buffered output block
    )
    per_tb = int(per_tb * 1.25)            # slack for compiler temporaries

    if tb is None:
        tb = _pick_tb(B, per_tb, budget)
    assert B % tb == 0, (B, tb)

    kernel = functools.partial(
        _asp_kernel,
        score_dtype=jnp.bfloat16 if use_bf16_scores else jnp.float32,
        approx_recip=bool(use_bf16_scores))

    out = pl.pallas_call(
        kernel,
        out_shape=jax.ShapeDtypeStruct((B, 2 * NH * D), jnp.float32),
        grid=(B // tb,),
        in_specs=[
            pl.BlockSpec((tb, D, T), lambda i: (i, 0, 0)),   # native (B, D, T)
            pl.BlockSpec((Hd, D), lambda i: (0, 0)),         # w1^T
            pl.BlockSpec((Hd, 1), lambda i: (0, 0)),         # b1
            pl.BlockSpec((NH, Hd), lambda i: (0, 0)),        # w2^T
        ],
        out_specs=pl.BlockSpec((tb, 2 * NH * D), lambda i: (i, 0)),
        compiler_params=pltpu.CompilerParams(
            dimension_semantics=("parallel",),               # megacore on v7x
            vmem_limit_bytes=vmem_limit),
    )(h, jnp.asarray(w1).T, jnp.asarray(b1).reshape(Hd, 1), jnp.asarray(w2).T)
    return out                                               # already PyTorch order


def ref_forward(h, w1, b1, w2):
    """Pure-JAX reference replicating the PyTorch forward exactly."""
    ht = jnp.swapaxes(h, -2, -1)                               # (B, T, D)
    scores = jnp.maximum(ht @ w1 + b1, 0.0) @ w2               # (B, T, NH)
    alpha = jax.nn.softmax(scores, axis=-2)                    # (B, T, NH)
    outs = []
    for head in range(w2.shape[1]):
        a = alpha[:, :, head]                                  # (B, T)
        mu = jnp.sum(h * a[:, None, :], axis=-1)               # (B, D)
        sig = jnp.sqrt(
            jnp.sum((h - mu[:, :, None]) ** 2 * a[:, None, :], axis=-1) + 1e-5)
        outs += [mu, sig]
    return jnp.concatenate(outs, axis=-1)


if __name__ == "__main__":
    B, in_dim, T = 16, 16, 16
    hid_dim, n_heads = 32, 2

    key = jax.random.PRNGKey(0)
    k_h, k_w1, k_b1, k_w2 = jax.random.split(key, 4)

    h = jax.random.normal(k_h, (B, in_dim, T), dtype=jnp.float32)
    # Linear(in_dim, hid_dim): stored as (in_dim, hid_dim); kernel takes the T.
    w1 = jax.random.normal(k_w1, (in_dim, hid_dim), dtype=jnp.float32) * 0.1
    b1 = jax.random.normal(k_b1, (hid_dim,), dtype=jnp.float32) * 0.1
    # Linear(hid_dim, n_heads, bias=False): (hid_dim, n_heads)
    w2 = jax.random.normal(k_w2, (hid_dim, n_heads), dtype=jnp.float32) * 0.1

    expected = ref_forward(h, w1, b1, w2)

    # f32 path (tight tolerance): tb auto-selected from the VMEM budget -> 8,
    # grid = (2,) so both TensorCores are used on megacore parts.
    out = jax.block_until_ready(atten_stats_pooling(h, w1, b1, w2))
    assert out.shape == (B, 2 * in_dim * n_heads), out.shape
    max_err = float(jnp.max(jnp.abs(out - expected)))
    assert jnp.allclose(out, expected, atol=5e-4, rtol=5e-4), max_err

    # bf16 score-path variant (v6e/v7x MXU-rate path); looser tolerance since
    # the fc operands and the softmax-denominator reciprocal are approximate.
    out_bf16 = jax.block_until_ready(
        atten_stats_pooling(h, w1, b1, w2, use_bf16_scores=True))
    max_err_bf16 = float(jnp.max(jnp.abs(out_bf16 - expected)))
    assert jnp.allclose(out_bf16, expected, atol=5e-2, rtol=5e-2), max_err_bf16

    print("KERNEL_OK")
</pallas_src>

<mosaic_0001>
module attributes {stable_mosaic.version = 11 : i64} {
  func.func @_asp_kernel(%arg0: i32, %arg1: memref<8x16x16xf32, #tpu.memory_space<vmem>>, %arg2: memref<32x16xf32, #tpu.memory_space<vmem>>, %arg3: memref<32x1xf32, #tpu.memory_space<vmem>>, %arg4: memref<2x32xf32, #tpu.memory_space<vmem>>, %arg5: memref<8x64xf32, #tpu.memory_space<vmem>>) attributes {dimension_semantics = [#tpu.dimension_semantics<parallel>], iteration_bounds = array<i64: 2>, scalar_prefetch = 0 : i64, scratch_operands = 0 : i64, tpu.core_type = #tpu.core_type<tc>, window_params = [{transform_indices = @transform_0, window_bounds = array<i64: 8, 16, 16>}, {pipeline_mode = #tpu.pipeline_mode<synchronous>, transform_indices = @transform_1, window_bounds = array<i64: 32, 16>}, {pipeline_mode = #tpu.pipeline_mode<synchronous>, transform_indices = @transform_2, window_bounds = array<i64: 32, 1>}, {pipeline_mode = #tpu.pipeline_mode<synchronous>, transform_indices = @transform_3, window_bounds = array<i64: 2, 32>}, {transform_indices = @transform_4, window_bounds = array<i64: 8, 64>}]} {
    %c0 = arith.constant 0 : index
    %c0_0 = arith.constant 0 : index
    %c0_1 = arith.constant 0 : index
    %0 = vector.load %arg1[%c0, %c0_0, %c0_1] : memref<8x16x16xf32, #tpu.memory_space<vmem>>, vector<8x16x16xf32>
    %c0_2 = arith.constant 0 : index
    %c0_3 = arith.constant 0 : index
    %1 = vector.load %arg2[%c0_2, %c0_3] : memref<32x16xf32, #tpu.memory_space<vmem>>, vector<32x16xf32>
    %2 = vector.shape_cast %1 : vector<32x16xf32> to vector<1x32x16xf32>
    %3 = vector.shape_cast %2 : vector<1x32x16xf32> to vector<1x32x16xf32>
    %4 = vector.broadcast %3 : vector<1x32x16xf32> to vector<8x32x16xf32>
    "tpu.trace_start"() <{level = 10 : i32, message = "bhd,bdt->bht"}> : () -> ()
    %cst = arith.constant dense<0.000000e+00> : vector<8x32x16xf32>
    %5 = tpu.matmul %4, %0, %cst {dimension_numbers = #tpu.dot_dimension_numbers<[2], [1], [1], [2], [0, 0, 0, 1, 1, 2], [0], [0]>} : vector<8x32x16xf32>, vector<8x16x16xf32>, vector<8x32x16xf32> -> vector<8x32x16xf32>
    "tpu.trace_stop"() : () -> ()
    %c0_4 = arith.constant 0 : index
    %c0_5 = arith.constant 0 : index
    %6 = vector.load %arg3[%c0_4, %c0_5] : memref<32x1xf32, #tpu.memory_space<vmem>>, vector<32x1xf32>
    %7 = vector.shape_cast %6 : vector<32x1xf32> to vector<1x32x1xf32>
    %8 = vector.broadcast %7 : vector<1x32x1xf32> to vector<8x32x16xf32>
    %9 = arith.addf %5, %8 : vector<8x32x16xf32>
    %cst_6 = arith.constant 0.000000e+00 : f32
    %10 = vector.broadcast %cst_6 : f32 to vector<8x32x16xf32>
    %11 = arith.maximumf %9, %10 : vector<8x32x16xf32>
    %c0_7 = arith.constant 0 : index
    %c0_8 = arith.constant 0 : index
    %12 = vector.load %arg4[%c0_7, %c0_8] : memref<2x32xf32, #tpu.memory_space<vmem>>, vector<2x32xf32>
    %13 = vector.shape_cast %12 : vector<2x32xf32> to vector<1x2x32xf32>
    %14 = vector.shape_cast %13 : vector<1x2x32xf32> to vector<1x2x32xf32>
    %15 = vector.broadcast %14 : vector<1x2x32xf32> to vector<8x2x32xf32>
    "tpu.trace_start"() <{level = 10 : i32, message = "bnh,bht->bnt"}> : () -> ()
    %cst_9 = arith.constant dense<0.000000e+00> : vector<8x2x16xf32>
    %16 = tpu.matmul %15, %11, %cst_9 {dimension_numbers = #tpu.dot_dimension_numbers<[2], [1], [1], [2], [0, 0, 0, 1, 1, 2], [0], [0]>} : vector<8x2x32xf32>, vector<8x32x16xf32>, vector<8x2x16xf32> -> vector<8x2x16xf32>
    "tpu.trace_stop"() : () -> ()
    %cst_10 = arith.constant dense<0xFF800000> : vector<8x2xf32>
    %17 = vector.multi_reduction <maximumf>, %16, %cst_10 [2] : vector<8x2x16xf32> to vector<8x2xf32>
    %18 = vector.shape_cast %17 : vector<8x2xf32> to vector<8x2x1xf32>
    %19 = vector.broadcast %18 : vector<8x2x1xf32> to vector<8x2x16xf32>
    %20 = arith.subf %16, %19 : vector<8x2x16xf32>
    %21 = math.exp %20 : vector<8x2x16xf32>
    %cst_11 = arith.constant dense<0.000000e+00> : vector<8x2xf32>
    %22 = vector.multi_reduction <add>, %21, %cst_11 [2] : vector<8x2x16xf32> to vector<8x2xf32>
    %23 = vector.shape_cast %22 : vector<8x2xf32> to vector<8x2x1xf32>
    %24 = tpu.reciprocal %23 : vector<8x2x1xf32> -> vector<8x2x1xf32>
    %25 = arith.mulf %0, %0 : vector<8x16x16xf32>
    %26 = tpu.concatenate %0, %25 in 1 : vector<8x16x16xf32>, vector<8x16x16xf32> -> vector<8x32x16xf32>
    "tpu.trace_start"() <{level = 10 : i32, message = "bnt,bkt->bnk"}> : () -> ()
    %cst_12 = arith.constant dense<0.000000e+00> : vector<8x2x32xf32>
    %27 = tpu.matmul %21, %26, %cst_12 {dimension_numbers = #tpu.dot_dimension_numbers<[2], [2], [1], [1], [0, 0, 0, 1, 1, 1], [0], [0]>} : vector<8x2x16xf32>, vector<8x32x16xf32>, vector<8x2x32xf32> -> vector<8x2x32xf32>
    "tpu.trace_stop"() : () -> ()
    %28 = vector.broadcast %24 : vector<8x2x1xf32> to vector<8x2x32xf32>
    %29 = arith.mulf %27, %28 : vector<8x2x32xf32>
    %30 = vector.extract_strided_slice %29 {offsets = [0, 0, 0], sizes = [8, 2, 16], strides = [1, 1, 1]} : vector<8x2x32xf32> to vector<8x2x16xf32>
    %31 = vector.extract_strided_slice %29 {offsets = [0, 0, 16], sizes = [8, 2, 16], strides = [1, 1, 1]} : vector<8x2x32xf32> to vector<8x2x16xf32>
    %32 = arith.mulf %30, %30 : vector<8x2x16xf32>
    %33 = arith.subf %31, %32 : vector<8x2x16xf32>
    %cst_13 = arith.constant 0.000000e+00 : f32
    %34 = vector.broadcast %cst_13 : f32 to vector<8x2x16xf32>
    %35 = arith.maximumf %33, %34 : vector<8x2x16xf32>
    %cst_14 = arith.constant 9.99999974E-6 : f32
    %36 = vector.broadcast %cst_14 : f32 to vector<8x2x16xf32>
    %37 = arith.addf %35, %36 : vector<8x2x16xf32>
    %38 = math.sqrt %37 : vector<8x2x16xf32>
    %39 = vector.extract_strided_slice %30 {offsets = [0, 0, 0], sizes = [8, 1, 16], strides = [1, 1, 1]} : vector<8x2x16xf32> to vector<8x1x16xf32>
    %40 = vector.shape_cast %39 : vector<8x1x16xf32> to vector<8x16xf32>
    %c0_15 = arith.constant 0 : index
    %c0_16 = arith.constant 0 : index
    %41 = vector.load %arg5[%c0_15, %c0_16] : memref<8x64xf32, #tpu.memory_space<vmem>>, vector<8x16xf32>
    tpu.vector_store %arg5[%c0_15, %c0_16], %40 {strides = array<i32>} : memref<8x64xf32, #tpu.memory_space<vmem>>, vector<8x16xf32>,
    %42 = vector.extract_strided_slice %38 {offsets = [0, 0, 0], sizes = [8, 1, 16], strides = [1, 1, 1]} : vector<8x2x16xf32> to vector<8x1x16xf32>
    %43 = vector.shape_cast %42 : vector<8x1x16xf32> to vector<8x16xf32>
    %c0_17 = arith.constant 0 : index
    %c16 = arith.constant 16 : index
    %44 = vector.load %arg5[%c0_17, %c16] : memref<8x64xf32, #tpu.memory_space<vmem>>, vector<8x16xf32>
    tpu.vector_store %arg5[%c0_17, %c16], %43 {strides = array<i32>} : memref<8x64xf32, #tpu.memory_space<vmem>>, vector<8x16xf32>,
    %45 = vector.extract_strided_slice %30 {offsets = [0, 1, 0], sizes = [8, 1, 16], strides = [1, 1, 1]} : vector<8x2x16xf32> to vector<8x1x16xf32>
    %46 = vector.shape_cast %45 : vector<8x1x16xf32> to vector<8x16xf32>
    %c0_18 = arith.constant 0 : index
    %c32 = arith.constant 32 : index
    %47 = vector.load %arg5[%c0_18, %c32] : memref<8x64xf32, #tpu.memory_space<vmem>>, vector<8x16xf32>
    tpu.vector_store %arg5[%c0_18, %c32], %46 {strides = array<i32>} : memref<8x64xf32, #tpu.memory_space<vmem>>, vector<8x16xf32>,
    %48 = vector.extract_strided_slice %38 {offsets = [0, 1, 0], sizes = [8, 1, 16], strides = [1, 1, 1]} : vector<8x2x16xf32> to vector<8x1x16xf32>
    %49 = vector.shape_cast %48 : vector<8x1x16xf32> to vector<8x16xf32>
    %c0_19 = arith.constant 0 : index
    %c48 = arith.constant 48 : index
    %50 = vector.load %arg5[%c0_19, %c48] : memref<8x64xf32, #tpu.memory_space<vmem>>, vector<8x16xf32>
    tpu.vector_store %arg5[%c0_19, %c48], %49 {strides = array<i32>} : memref<8x64xf32, #tpu.memory_space<vmem>>, vector<8x16xf32>,
    return
  }
  func.func @transform_0(%arg0: i32) -> (i32, i32, i32) {
    %c0_i32 = arith.constant 0 : i32
    %c0_i32_0 = arith.constant 0 : i32
    %c0_i32_1 = arith.constant 0 : i32
    return %arg0, %c0_i32, %c0_i32_0 : i32, i32, i32
  }
  func.func @transform_1(%arg0: i32) -> (i32, i32) {
    %c0_i32 = arith.constant 0 : i32
    %c0_i32_0 = arith.constant 0 : i32
    %c0_i32_1 = arith.constant 0 : i32
    return %c0_i32, %c0_i32_0 : i32, i32
  }
  func.func @transform_2(%arg0: i32) -> (i32, i32) {
    %c0_i32 = arith.constant 0 : i32
    %c0_i32_0 = arith.constant 0 : i32
    %c0_i32_1 = arith.constant 0 : i32
    return %c0_i32, %c0_i32_0 : i32, i32
  }
  func.func @transform_3(%arg0: i32) -> (i32, i32) {
    %c0_i32 = arith.constant 0 : i32
    %c0_i32_0 = arith.constant 0 : i32
    %c0_i32_1 = arith.constant 0 : i32
    return %c0_i32, %c0_i32_0 : i32, i32
  }
  func.func @transform_4(%arg0: i32) -> (i32, i32) {
    %c0_i32 = arith.constant 0 : i32
    %c0_i32_0 = arith.constant 0 : i32
    return %arg0, %c0_i32 : i32, i32
  }
}

</mosaic_0001>

<bundles_post_ra>
// kernel: tpu_custom_call.1
= control target key start
LH: loop header
LB: loop body
LE: loop exit
PB: predicated region body
PF: predicated region fallthrough
CT: control target
= control target key end

     0   :  { %9 = vsyncpa [#allocation3], 0  ;;  %s4160_s0 = inlined_call_operand.hbm [shape: f32[16,16,16], index: 0, kind: input, shape index: {}]   ;;  %s4161_s1 = inlined_call_operand.vmem [shape: f32[32,16], index: 1, kind: input, shape index: {}]   ;;  %s4162_s2 = inlined_call_operand.vmem [shape: f32[32,1], index: 2, kind: input, shape index: {}]   ;;  %s4163_s3 = inlined_call_operand.vmem [shape: f32[2,32], index: 3, kind: input, shape index: {}]   ;;  %s4164_s4 = inlined_call_operand.hbm [shape: f32[16,64], index: 4, kind: output, shape index: {}]  }
   0x1   :  { %11 = vsyncpa [#allocation3 + $0x1], 0 }
   0x2   :  { %12 = vsyncpa [#allocation4], 0 }
   0x3   :  { %14 = vsyncpa [#allocation4 + $0x1], 0  ;;  %s3490_s15 = smov 0   ;;  %s3492_s16 = smov 0  }
   0x4   :  { %s3494_s17 = smov 0   ;;  %s3496_s18 = smov 0  }
   0x5 LB: > { %s3511_s19 = sadd.s32 4294967295, %s3453_s18   ;;  %s2629_s20 = sadd.s32 4294967294, %s3453_s18   ;;  %s3453_s18 = sphi %s3496_s18, %s4179_s18   ;;  %s3449_s17 = sphi %s3494_s17, %s4178_s17   ;;  %s3445_s16 = sphi %s3492_s16, %s4177_s16   ;;  %s3441_s15 = sphi %s3490_s15, %s4176_s15  }
   0x6   : > { %s3515_s21 = sadd.s32 1, %s3453_s18   ;;  %s27_s22 = sadd.s32 1, %s3449_s17 }
   0x7   : > { %s24_s23 = ssub.s32 %s3453_s18, %s3515_s21  ;;  %p34_p0 = scmp.ne.s32.totalorder %s3449_s17, %s3445_s16 }
   0x8   : > { %p25_p1 = scmp.eq.s32.totalorder %s24_s23, 0  ;;  %p35_p2 = scmp.eq.s32.totalorder %s3453_s18, 0 }
   0x9   : > { %p40_p3 = scmp.ne.s32.totalorder %s3445_s16, %s3441_s15  ;;  %p41_p4 = scmp.eq.s32.totalorder %s3511_s19, 0 }
   0xa   : > { %s3527_s24 = scalar_select %p25_p1, %s3449_s17, %s27_s22  }
   0xb   : > { %p3529_p5 = por %p35_p2, %p34_p0  ;;  %p3533_p6 = por %p41_p4, %p40_p3 }
   0xc   : > { %p127_p7 = scmp.eq.s32.totalorder %s3511_s19, 1  ;;  %p133_p8 = scmp.eq.s32.totalorder %s2629_s20, 1 }
   0xd   : > { %p3265_p10 = scmp.lt.s32.totalorder %s3453_s18, 2  ;;  %s162_s29 = sand.u32 1, %s3449_s17  }
   0xe   : > { %p3540_p11 = por %p127_p7, %p34_p0  ;;  %p3544_p12 = por %p133_p8, %p40_p3 }
   0xf   : > { %s2724_s30 = sshll.u32 %s3453_s18, 11  ;;  %s2632_s5 = sshll.u32 %s162_s29, 7 }
  0x10   : > { %s4168_s27 = scalar_select %p3540_p11, 1, 0 }
  0x11   : > { %s4169_s28 = scalar_select %p3544_p12, 1, 0 }
  0x12   : > { %s3553_s8 = scalar_lea.hbm %s4160_s0, %s2724_s30  ;;  %s166_s9 = scalar_lea.vmem [#allocation2], %s2632_s5 }
  0x13   : > { %s174_s10 = sshll.u32 %s166_s9, 4  ;;  %p3557_p13 = pnand %p3265_p10, %p3529_p5  ;;  %s3561_s10 = int_to_ptr.vmem [resolvable:$true] %s174_s10 }
  0x14   : > { %s3563_s12 = scalar_lea.sflag [#allocation3], %s162_s29  ;;  %s3357_s13 = scalar_lea.hbm %s3553_s8, 2048 }
  0x15   : > { %p3358_p0 = scmp.ne.s32.totalorder %s3553_s8, %s3357_s13  ;;  %p3359_p1 = pneg %p3557_p13 }
  0x16   : > { %s3362_s22 = scalar_lea.hbm %s4160_s0, 4096  ;;  %p3363_p4 = scmp.lt.u32.totalorder %s3553_s8, %s4160_s0 }
  0x17   : > { %p3360_p2 = pnand %p3359_p1, %p3358_p0  ;;  %p3364_p5 = scmp.lt.u32.totalorder %s3362_s22, %s3357_s13 }
  0x18   : > { %p3366_p8 = scmp.lt.u32.totalorder %s3357_s13, %s3553_s8 }
  0x19   : > { %p3361_p3 = pneg %p3360_p2  ;;  %p3365_p7 = por %p3364_p5, %p3363_p4 }
  0x1b   : > { %p3367_p10 = por %p3366_p8, %p3365_p7 }
  0x1d   : > { %p3368_p9 = pnand %p3367_p10, %p3361_p3 }
  0x1f   : > { %3371 = shalt.err (!%p3368_p9)
}
  0x20   : > { %s3372_s29 = scalar_lea.vmem %s3561_s10, 2048  ;;  %s3455_s30 = smov [#allocation2]  }
  0x21   : > { %p3373_p0 = scmp.ne.s32.totalorder %s3561_s10, %s3372_s29  ;;  %s3377_s5 = sshll.u32 %s3455_s30, 4  ;;  %s3378_s5 = int_to_ptr.vmem [resolvable:$false] %s3377_s5 }
  0x22   : > { %s3379_s6 = scalar_lea.vmem %s3378_s5, 4096  ;;  %p3380_p11 = scmp.lt.s32.totalorder %s3561_s10, %s3378_s5 }
  0x23   : > { %p3375_p2 = pnand %p3373_p0, %p3359_p1  ;;  %p3381_p4 = scmp.lt.s32.totalorder %s3379_s6, %s3372_s29 }
  0x25   : > { %p3376_p12 = pneg %p3375_p2  ;;  %p3382_p5 = por %p3381_p4, %p3380_p11 }
  0x27   : > { %p3383_p7 = pnand %p3382_p5, %p3376_p12 }
  0x29   : > { %3386 = shalt.err (!%p3383_p7)
}
  0x2a   : > { %s3456_s7 = smov 128   ;;  %s3457_s9 = smov 8  }
  0x2b   : > { %3260 = dma.hbm_to_vmem [thread:$0]  (!%p3557_p13), %s3553_s8, 2048, %s3561_s10, %s3563_s12, %s3456_s7, %s3456_s7, %s3457_s9  }
  0x2c   : > { %p2636_p9 = scmp.ge.s32.totalorder %s3453_s18, 1  ;;  %p182_p1 = scmp.lt.s32.totalorder %s3453_s18, 3 }
  0x2e   : > { %p183_p3 = pnand %p2636_p9, %p182_p1 }
  0x2f   : > { %s3594_s13 = sand.u32 (!%p183_p3), 1, %s3445_s16  }
  0x30   : > { %186 = sbr.rel (%p183_p3) target bundleno = 1192 (0x4a8), region = 36  ;;  %s2637_s14 = sshll.u32 (!%p183_p3), %s3594_s13, 7 }
  0x31   : > { %s189_s20 = scalar_lea.sflag (!%p183_p3), [#allocation3], %s3594_s13  ;;  %s3598_s22 = scalar_lea.vmem (!%p183_p3), [#allocation2], %s2637_s14 }
  0x37   : > { %3432 = dma.done.wait (%p3533_p6), %s189_s20, 2048  }
  0x38   : > { %3434 = vsyncadd (%p3533_p6), %s189_s20, 4294965248  ;;  %v3458_v0 = vmov 0   ;;  %vm262_vm0 = vcmask 130048   ;;  %v218_v1 = vld [vmem:[%s3598_s22] sm:$0xff]  ;;  %v219_v2 = vld [vmem:[%s3598_s22 + $0x8] sm:$0xff]  ;;  %v3459_v57 = vmov 0.0|0.0  }
  0x39   : > { %3307 = vset.pattern.permute.xlu0 %v3458_v0  ;;  %3308 = vset.pattern.permute.xlu1 %v3458_v0  ;;  %v220_v3 = vld [vmem:[%s3598_s22 + $0x10] sm:$0xff]  ;;  %v3607_v4 = vpack.c.bf16 %v219_v2, %v218_v1  ;;  %v3609_v5 = vmul.f32 %v218_v1, %v218_v1  ;;  %v3611_v6 = vmul.f32 %v219_v2, %v219_v2  ;;  %v221_v7 = vld [vmem:[%s3598_s22 + $0x18] sm:$0xff]  ;;  %v3619_v9 = vld [vmem:[%s4161_s1] sm:$0xff]  ;;  %vm3460_vm1 = vmmov 0   ;;  %s3462_s10 = smov 16   ;;  %s2638_s11 = sshll.u32 %s3594_s13, 3 }
  0x3a   : > { %v3614_v8 = vmul.f32 %v220_v3, %v220_v3  ;;  %v3621_v10 = vpack.c.bf16 %v221_v7, %v220_v3  ;;  %v3623_v11 = vmul.f32 %v221_v7, %v221_v7  ;;  %2857 = vmatprep.mubr.msk.f32.mxu0 %vm262_vm0, %v3619_v9  ;;  %2867 = vmatprep.mubr.msk.f32.mxu1 %vm262_vm0, %v3619_v9  ;;  %v3632_v12 = vld [vmem:[%s4161_s1 + $0x8] sm:$0xff]  ;;  %v222_v13 = vld [vmem:[%s3598_s22 + $0x20] sm:$0xff]  ;;  %v224_v17 = vld [vmem:[%s3598_s22 + $0x30] sm:$0xff]  ;;  %v3461_v58 = vmov 0.0   ;;  %s4066_s12 = scalar_lea.vmem [#allocation5], %s2638_s11  ;;  %s3463_s23 = smov 32  }
  0x3b   : > { %3110 = vmatprep.subr.bf16.mxu0 %v3607_v4  ;;  %v3194_v14 = vpack.c.bf16 %v3611_v6, %v3609_v5  ;;  %v223_v15 = vld [vmem:[%s3598_s22 + $0x28] sm:$0xff]  ;;  %v3639_v16 = vmul.f32 %v222_v13, %v222_v13  ;;  %v225_v18 = vld [vmem:[%s3598_s22 + $0x38] sm:$0xff]  ;;  %v226_v22 = vld [vmem:[%s3598_s22 + $0x40] sm:$0xff]  ;;  %v3662_v27 = vmul.f32 %v224_v17, %v224_v17  ;;  %vm988_vm2 = vcmask 261120   ;;  %s2720_s25 = sshll.u32 %s3511_s19, 7  ;;  %s2559_s29 = sshll.u32 %s4066_s12, 4  ;;  %s4116_s29 = int_to_ptr.vmem [resolvable:$true] %s2559_s29 }
  0x3c   : > { %3114 = vmatprep.subr.bf16.mxu1 %v3621_v10  ;;  %v3202_v19 = vpack.c.bf16 %v3623_v11, %v3614_v8  ;;  %3112 = vmatpush3.bf16.msra.mxu0 %v3607_v4  ;;  %v3647_v20 = vpack.c.bf16 %v223_v15, %v222_v13  ;;  %v3649_v21 = vmul.f32 %v223_v15, %v223_v15  ;;  %v227_v23 = vld [vmem:[%s3598_s22 + $0x48] sm:$0xff]  ;;  %v228_v24 = vld [vmem:[%s3598_s22 + $0x50] sm:$0xff]  ;;  %v229_v30 = vld [vmem:[%s3598_s22 + $0x58] sm:$0xff]  ;;  %vm1552_vm4 = vcmask 123904   ;;  %s4114_s6 = scalar_lea.hbm %s4164_s4, %s2720_s25  ;;  %s2546_s7 = scalar_lea.sflag [#allocation4], %s3594_s13 }
  0x3d   : > { %3116 = vmatpush3.bf16.msra.mxu1 %v3621_v10  ;;  %v3658_v25 = vld [vmem:[%s4161_s1 + $0x10] sm:$0xff]  ;;  %v3660_v26 = vpack.c.bf16 %v225_v18, %v224_v17  ;;  %v3664_v28 = vmul.f32 %v225_v18, %v225_v18  ;;  %v3666_v29 = vpack.c.bf16 %v227_v23, %v226_v22  ;;  %v3672_v32 = vmul.f32 %v226_v22, %v226_v22  ;;  %v230_v38 = vld [vmem:[%s3598_s22 + $0x60] sm:$0xff]  ;;  %v237_v39 = vld [vmem:[%s4161_s1 + $0x18] sm:$0xff]  ;;  %s3387_s9 = scalar_lea.vmem %s4116_s29, 128  ;;  %p4173_p11 = scmp.ne.s32.totalorder %s4168_s27, 0 }
  0x3e   : > { %3118 = vmatprep.subr.bf16.mxu0 %v3647_v20  ;;  %v3210_v31 = vpack.c.bf16 %v3649_v21, %v3639_v16  ;;  %v3674_v33 = vmul.f32 %v227_v23, %v227_v23  ;;  %v3676_v34 = vpack.c.bf16 %v229_v30, %v228_v24  ;;  %v3683_v36 = vmul.f32 %v228_v24, %v228_v24  ;;  %v231_v41 = vld [vmem:[%s3598_s22 + $0x68] sm:$0xff]  ;;  %v232_v45 = vld [vmem:[%s3598_s22 + $0x70] sm:$0xff]  ;;  %v233_v46 = vld [vmem:[%s3598_s22 + $0x78] sm:$0xff]  ;;  %p3388_p6 = scmp.ne.s32.totalorder %s4116_s29, %s3387_s9  ;;  %s3464_s19 = smov [#allocation5]  }
  0x3f   : > { %2858 = vmatmul.mubr.msk.f32.vlgmr.msra.gmra.mrb[0].mxu0 %vm262_vm0, %v3632_v12  ;;  %3122 = vmatprep.subr.bf16.mxu1 %v3660_v26  ;;  %v3218_v35 = vpack.c.bf16 %v3664_v28, %v3662_v27  ;;  %v3685_v37 = vmul.f32 %v229_v30, %v229_v30  ;;  %v3698_v42 = vmul.f32 %v230_v38, %v230_v38  ;;  %v238_v49 = vld [vmem:[%s4162_s2] sm:$0xff]  ;;  %v240_v51 = vld [vmem:[%s4162_s2 + $0x10] sm:$0xff]  ;;  %v239_v55 = vld [vmem:[%s4162_s2 + $0x8] sm:$0xff]  ;;  %vm2466_vm5 = vcmask 1041409   ;;  %s3391_s14 = sshll.u32 %s3464_s19, 4  ;;  %s3392_s14 = int_to_ptr.vmem [resolvable:$false] %s3391_s14 }
  0x40   : > { %2868 = vmatmul.mubr.msk.f32.vlgmr.msra.gmra.mrb[0].mxu1 %vm262_vm0, %v3632_v12  ;;  %2860 = vmatprep.mubr.msk.f32.mxu0 %vm262_vm0, %v3658_v25  ;;  %v3226_v40 = vpack.c.bf16 %v3674_v33, %v3672_v32  ;;  %v3705_v44 = vmul.f32 %v231_v41, %v231_v41  ;;  %v3711_v47 = vmul.f32 %v232_v45, %v232_v45  ;;  %v241_v56 = vld [vmem:[%s4162_s2 + $0x18] sm:$0xff]  ;;  %vm3887_vm3 = vmpackc.low %vm262_vm0, %vm262_vm0  ;;  %vm2469_vm6 = vcmask 1042434   ;;  %p3389_p12 = pnand %p3388_p6, %p4173_p11  ;;  %s3393_s20 = scalar_lea.vmem %s3392_s14, 256 }
  0x41   : > { %2870 = vmatprep.mubr.msk.f32.mxu1 %vm262_vm0, %v3658_v25  ;;  %3120 = vmatpush3.bf16.msra.mxu0 %v3647_v20  ;;  %v3234_v43 = vpack.c.bf16 %v3685_v37, %v3683_v36  ;;  %v3713_v48 = vmul.f32 %v233_v46, %v233_v46  ;;  %v3732_v53 = vpack.c.bf16 %v231_v41, %v230_v38  ;;  %vm2472_vm7 = vcmask 1043459   ;;  %p3394_p8 = scmp.lt.s32.totalorder %s4116_s29, %s3392_s14  ;;  %p3395_p10 = scmp.lt.s32.totalorder %s3393_s20, %s3387_s9 }
  0x42   : > { %3124 = vmatpush3.bf16.msra.mxu1 %v3660_v26  ;;  %3126 = vmatprep.subr.bf16.mxu0 %v3666_v29  ;;  %v3242_v50 = vpack.c.bf16 %v3705_v44, %v3698_v42  ;;  %v3736_v54 = vpack.c.bf16 %v233_v46, %v232_v45  ;;  %vm2475_vm8 = vcmask 1044484   ;;  %vm2478_vm9 = vcmask 1045509   ;;  %p3390_p13 = pneg %p3389_p12 }
  0x43   : > { %2861 = vmatmul.mubr.msk.f32.gmra.mrb[2].mxu0 %vm262_vm0, %v237_v39  ;;  %3130 = vmatprep.subr.bf16.mxu1 %v3676_v34  ;;  %v3250_v52 = vpack.c.bf16 %v3713_v48, %v3711_v47  ;;  %vm2481_vm10 = vcmask 1046534   ;;  %vm2484_vm11 = vcmask 1047559   ;;  %p3396_p0 = por %p3395_p10, %p3394_p8 }
  0x44   : > { %2871 = vmatmul.mubr.msk.f32.gmra.mrb[2].mxu1 %vm262_vm0, %v237_v39  ;;  %2877 = vmatprep.mubr.msk.f32.mxu0 %vm262_vm0, %v3619_v9 }
  0x45   : > { %2887 = vmatprep.mubr.msk.f32.mxu1 %vm262_vm0, %v3619_v9  ;;  %244 = vperm.xlu0 %3307, %v238_v49   ;;  %p3397_p2 = pnand %p3396_p0, %p3390_p13 }
  0x46   : > { %254 = vperm.xlu1 %3308, %v240_v51  }
  0x47   : > { %2878 = vmatmul.mubr.msk.f32.vlgmr.msra.gmra.mrb[4].mxu0 %vm262_vm0, %v3632_v12 }
  0x48   : > { %2888 = vmatmul.mubr.msk.f32.vlgmr.msra.gmra.mrb[4].mxu1 %vm262_vm0, %v3632_v12  ;;  %2880 = vmatprep.mubr.msk.f32.mxu0 %vm262_vm0, %v3658_v25 }
  0x49   : > { %2890 = vmatprep.mubr.msk.f32.mxu1 %vm262_vm0, %v3658_v25  ;;  %3128 = vmatpush3.bf16.msra.mxu0 %v3666_v29 }
  0x4a   : > { %3132 = vmatpush3.bf16.msra.mxu1 %v3676_v34  ;;  %3134 = vmatprep.subr.bf16.mxu0 %v3732_v53 }
  0x4b   : > { %2881 = vmatmul.mubr.msk.f32.gmra.mrb[6].mxu0 %vm262_vm0, %v237_v39  ;;  %3138 = vmatprep.subr.bf16.mxu1 %v3736_v54 }
  0x4c   : > { %2891 = vmatmul.mubr.msk.f32.gmra.mrb[6].mxu1 %vm262_vm0, %v237_v39  ;;  %2897 = vmatprep.mubr.msk.f32.mxu0 %vm262_vm0, %v3619_v9 }
  0x4d   : > { %2907 = vmatprep.mubr.msk.f32.mxu1 %vm262_vm0, %v3619_v9  ;;  %249 = vperm.xlu0 %3307, %v239_v55  }
  0x4e   : > { %259 = vperm.xlu1 %3308, %v241_v56  }
  0x4f   : > { %2898 = vmatmul.mubr.msk.f32.vlgmr.msra.gmra.mrb[8].mxu0 %vm262_vm0, %v3632_v12 }
  0x50   : > { %2908 = vmatmul.mubr.msk.f32.vlgmr.msra.gmra.mrb[8].mxu1 %vm262_vm0, %v3632_v12  ;;  %2900 = vmatprep.mubr.msk.f32.mxu0 %vm262_vm0, %v3658_v25 }
  0x51   : > { %2910 = vmatprep.mubr.msk.f32.mxu1 %vm262_vm0, %v3658_v25  ;;  %3136 = vmatpush3.bf16.msra.mxu0 %v3732_v53 }
  0x52   : > { %3140 = vmatpush3.bf16.msra.mxu1 %v3736_v54  ;;  %3141 = vmatprep.subr.bf16.mxu0 %v3459_v57 }
  0x53   : > { %2901 = vmatmul.mubr.msk.f32.gmra.mrb[10].mxu0 %vm262_vm0, %v237_v39  ;;  %3147 = vmatprep.subr.bf16.mxu1 %v3459_v57 }
  0x54   : > { %2911 = vmatmul.mubr.msk.f32.gmra.mrb[10].mxu1 %vm262_vm0, %v237_v39  ;;  %2917 = vmatprep.mubr.msk.f32.mxu0 %vm262_vm0, %v3619_v9 }
  0x55   : > { %2927 = vmatprep.mubr.msk.f32.mxu1 %vm262_vm0, %v3619_v9 }
  0x57   : > { %2918 = vmatmul.mubr.msk.f32.vlgmr.msra.gmra.mrb[12].mxu0 %vm262_vm0, %v3632_v12 }
  0x58   : > { %2928 = vmatmul.mubr.msk.f32.vlgmr.msra.gmra.mrb[12].mxu1 %vm262_vm0, %v3632_v12  ;;  %2920 = vmatprep.mubr.msk.f32.mxu0 %vm262_vm0, %v3658_v25 }
  0x59   : > { %2930 = vmatprep.mubr.msk.f32.mxu1 %vm262_vm0, %v3658_v25 }
  0x5b   : > { %2921 = vmatmul.mubr.msk.f32.gmra.mrb[14].mxu0 %vm262_vm0, %v237_v39 }
  0x5c   : > { %2931 = vmatmul.mubr.msk.f32.gmra.mrb[14].mxu1 %vm262_vm0, %v237_v39  ;;  %2941 = vmatprep.mubr.msk.f32.mxu0 %vm3460_vm1, %v3461_v58 }
  0x5d   : > { %2952 = vmatprep.mubr.msk.f32.mxu1 %vm3460_vm1, %v3461_v58 }
  0xc4   : > { %v3792_v59 = vpop.permute.xlu0 %244 }
  0xc5   : > { %v3794_v60 = vpop.permute.xlu1 %254 }
  0xcc   : > { %v3796_v61 = vpop.permute.xlu0 %249 }
  0xcd   : > { %v3802_v15 = vpop.permute.xlu1 %259 }
 0x112   : > { %v2859_v62 = vpop.f32.mrb[0].mxu0 }
 0x113   : > { %v347_v63 = vadd.f32 %v2859_v62, %v3796_v61  ;;  %v2869_v0 = vpop.f32.mrb[0].mxu1  ;;  %v341_v1 = vpop.f32.mrb[1].mxu0 }
 0x114   : > { %v432_v2 = vadd.f32 %v2869_v0, %v3796_v61  ;;  %v342_v3 = vadd.f32 %v341_v1, %v3792_v59  ;;  %v426_v7 = vpop.f32.mrb[1].mxu1 }
 0x115   : > { %v956_v9 = vmax.f32 %v347_v63, 0.0  ;;  %v427_v12 = vadd.f32 %v426_v7, %v3792_v59 }
 0x116   : > { %v960_v13 = vmax.f32 %v432_v2, 0.0  ;;  %v955_v17 = vmax.f32 %v342_v3, 0.0  ;;  %v2862_v18 = vpop.f32.mrb[2].mxu0 }
 0x117   : > { %v959_v22 = vmax.f32 %v427_v12, 0.0  ;;  %v357_v23 = vadd.f32 %v2862_v18, %v3802_v15  ;;  %v2872_v24 = vpop.f32.mrb[2].mxu1  ;;  %v351_v25 = vpop.f32.mrb[3].mxu0 }
 0x118   : > { %v3142_v30 = vpack.c.bf16 %v956_v9, %v955_v17  ;;  %v442_v38 = vadd.f32 %v2872_v24, %v3802_v15  ;;  %v352_v39 = vadd.f32 %v351_v25, %v3794_v60  ;;  %v436_v41 = vpop.f32.mrb[3].mxu1  ;;  %v3817_v24 = vld [vmem:[%s4163_s3] sm:$0x3] }
 0x119   : > { %v3148_v45 = vpack.c.bf16 %v960_v13, %v959_v22  ;;  %v958_v46 = vmax.f32 %v357_v23, 0.0  ;;  %v437_v49 = vadd.f32 %v436_v41, %v3794_v60 }
 0x11a   : > { %v962_v51 = vmax.f32 %v442_v38, 0.0  ;;  %v957_v55 = vmax.f32 %v352_v39, 0.0  ;;  %v2879_v56 = vpop.f32.mrb[4].mxu0  ;;  %3143 = vmatpush3.bf16.msra.mxu0 %v3142_v30 }
 0x11b   : > { %v961_v62 = vmax.f32 %v437_v49, 0.0  ;;  %v517_v63 = vadd.f32 %v2879_v56, %v3796_v61  ;;  %v2889_v0 = vpop.f32.mrb[4].mxu1  ;;  %3149 = vmatpush3.bf16.msra.mxu1 %v3148_v45  ;;  %v511_v1 = vpop.f32.mrb[5].mxu0  ;;  %3144 = vmatprep.subr.bf16.mxu0 %v3459_v57 }
 0x11c   : > { %v3145_v2 = vpack.c.bf16 %v958_v46, %v957_v55  ;;  %v602_v3 = vadd.f32 %v2889_v0, %v3796_v61  ;;  %v512_v7 = vadd.f32 %v511_v1, %v3792_v59  ;;  %v596_v9 = vpop.f32.mrb[5].mxu1  ;;  %3150 = vmatprep.subr.bf16.mxu1 %v3459_v57 }
 0x11d   : > { %v3151_v12 = vpack.c.bf16 %v962_v51, %v961_v62  ;;  %v964_v13 = vmax.f32 %v517_v63, 0.0  ;;  %v597_v17 = vadd.f32 %v596_v9, %v3792_v59 }
 0x11e   : > { %v968_v18 = vmax.f32 %v602_v3, 0.0  ;;  %v963_v22 = vmax.f32 %v512_v7, 0.0  ;;  %v2882_v23 = vpop.f32.mrb[6].mxu0  ;;  %3146 = vmatpush3.bf16.msra.mxu0 %v3145_v2 }
 0x11f   : > { %v967_v25 = vmax.f32 %v597_v17, 0.0  ;;  %v527_v30 = vadd.f32 %v2882_v23, %v3802_v15  ;;  %v2892_v38 = vpop.f32.mrb[6].mxu1  ;;  %3152 = vmatpush3.bf16.msra.mxu1 %v3151_v12  ;;  %v521_v39 = vpop.f32.mrb[7].mxu0  ;;  %3153 = vmatprep.subr.bf16.mxu0 %v3459_v57 }
 0x120   : > { %v3154_v41 = vpack.c.bf16 %v964_v13, %v963_v22  ;;  %v612_v45 = vadd.f32 %v2892_v38, %v3802_v15  ;;  %v522_v46 = vadd.f32 %v521_v39, %v3794_v60  ;;  %v606_v49 = vpop.f32.mrb[7].mxu1  ;;  %3159 = vmatprep.subr.bf16.mxu1 %v3459_v57 }
 0x121   : > { %v3160_v51 = vpack.c.bf16 %v968_v18, %v967_v25  ;;  %v966_v55 = vmax.f32 %v527_v30, 0.0  ;;  %v607_v56 = vadd.f32 %v606_v49, %v3794_v60  ;;  %2942 = vmatmul.mubr.msk.f32.vlgmr.msra.gmra.mrb[16].mxu0 %vm988_vm2, %v3817_v24 }
 0x122   : > { %v970_v62 = vmax.f32 %v612_v45, 0.0  ;;  %v965_v63 = vmax.f32 %v522_v46, 0.0  ;;  %2953 = vmatmul.mubr.msk.f32.vlgmr.msra.gmra.mrb[16].mxu1 %vm988_vm2, %v3817_v24  ;;  %v2899_v0 = vpop.f32.mrb[8].mxu0  ;;  %3155 = vmatpush3.bf16.msra.mxu0 %v3154_v41 }
 0x123   : > { %v969_v1 = vmax.f32 %v607_v56, 0.0  ;;  %v687_v2 = vadd.f32 %v2899_v0, %v3796_v61  ;;  %v2909_v3 = vpop.f32.mrb[8].mxu1  ;;  %3161 = vmatpush3.bf16.msra.mxu1 %v3160_v51  ;;  %v681_v7 = vpop.f32.mrb[9].mxu0  ;;  %3156 = vmatprep.subr.bf16.mxu0 %v3459_v57 }
 0x124   : > { %v3157_v9 = vpack.c.bf16 %v966_v55, %v965_v63  ;;  %v772_v12 = vadd.f32 %v2909_v3, %v3796_v61  ;;  %v682_v13 = vadd.f32 %v681_v7, %v3792_v59  ;;  %v766_v17 = vpop.f32.mrb[9].mxu1  ;;  %3162 = vmatprep.subr.bf16.mxu1 %v3459_v57  ;;  %2963 = vmatprep.mubr.msk.f32.mxu0 %vm3460_vm1, %v3461_v58 }
 0x125   : > { %v3163_v18 = vpack.c.bf16 %v970_v62, %v969_v1  ;;  %v972_v22 = vmax.f32 %v687_v2, 0.0  ;;  %v767_v23 = vadd.f32 %v766_v17, %v3792_v59  ;;  %2974 = vmatprep.mubr.msk.f32.mxu1 %vm3460_vm1, %v3461_v58 }
 0x126   : > { %v976_v25 = vmax.f32 %v772_v12, 0.0  ;;  %v971_v30 = vmax.f32 %v682_v13, 0.0  ;;  %v2902_v38 = vpop.f32.mrb[10].mxu0  ;;  %3158 = vmatpush3.bf16.msra.mxu0 %v3157_v9 }
 0x127   : > { %v975_v39 = vmax.f32 %v767_v23, 0.0  ;;  %v697_v41 = vadd.f32 %v2902_v38, %v3802_v15  ;;  %v2912_v45 = vpop.f32.mrb[10].mxu1  ;;  %3164 = vmatpush3.bf16.msra.mxu1 %v3163_v18  ;;  %v691_v46 = vpop.f32.mrb[11].mxu0  ;;  %3165 = vmatprep.subr.bf16.mxu0 %v3459_v57 }
 0x128   : > { %v3166_v49 = vpack.c.bf16 %v972_v22, %v971_v30  ;;  %v782_v51 = vadd.f32 %v2912_v45, %v3802_v15  ;;  %v692_v55 = vadd.f32 %v691_v46, %v3794_v60  ;;  %v776_v56 = vpop.f32.mrb[11].mxu1  ;;  %3171 = vmatprep.subr.bf16.mxu1 %v3459_v57 }
 0x129   : > { %v3172_v62 = vpack.c.bf16 %v976_v25, %v975_v39  ;;  %v974_v63 = vmax.f32 %v697_v41, 0.0  ;;  %v777_v0 = vadd.f32 %v776_v56, %v3794_v60  ;;  %2964 = vmatmul.mubr.msk.f32.vlgmr.msra.gmra.mrb[18].mxu0 %vm988_vm2, %v3817_v24 }
 0x12a   : > { %v978_v1 = vmax.f32 %v782_v51, 0.0  ;;  %v973_v2 = vmax.f32 %v692_v55, 0.0  ;;  %v2919_v3 = vpop.f32.mrb[12].mxu0  ;;  %2975 = vmatmul.mubr.msk.f32.vlgmr.msra.gmra.mrb[18].mxu1 %vm988_vm2, %v3817_v24  ;;  %3167 = vmatpush3.bf16.msra.mxu0 %v3166_v49 }
 0x12b   : > { %v977_v7 = vmax.f32 %v777_v0, 0.0  ;;  %v857_v9 = vadd.f32 %v2919_v3, %v3796_v61  ;;  %v2929_v12 = vpop.f32.mrb[12].mxu1  ;;  %3173 = vmatpush3.bf16.msra.mxu1 %v3172_v62  ;;  %v851_v13 = vpop.f32.mrb[13].mxu0  ;;  %3168 = vmatprep.subr.bf16.mxu0 %v3459_v57 }
 0x12c   : > { %v3169_v17 = vpack.c.bf16 %v974_v63, %v973_v2  ;;  %v942_v18 = vadd.f32 %v2929_v12, %v3796_v61  ;;  %v852_v22 = vadd.f32 %v851_v13, %v3792_v59  ;;  %v936_v23 = vpop.f32.mrb[13].mxu1  ;;  %3174 = vmatprep.subr.bf16.mxu1 %v3459_v57  ;;  %2985 = vmatprep.mubr.msk.f32.mxu0 %vm3460_vm1, %v3461_v58 }
 0x12d   : > { %v3175_v25 = vpack.c.bf16 %v978_v1, %v977_v7  ;;  %v980_v30 = vmax.f32 %v857_v9, 0.0  ;;  %v937_v38 = vadd.f32 %v936_v23, %v3792_v59  ;;  %2996 = vmatprep.mubr.msk.f32.mxu1 %vm3460_vm1, %v3461_v58 }
 0x12e   : > { %v984_v39 = vmax.f32 %v942_v18, 0.0  ;;  %v979_v41 = vmax.f32 %v852_v22, 0.0  ;;  %v2922_v45 = vpop.f32.mrb[14].mxu0  ;;  %3170 = vmatpush3.bf16.msra.mxu0 %v3169_v17 }
 0x12f   : > { %v983_v61 = vmax.f32 %v937_v38, 0.0  ;;  %v867_v46 = vadd.f32 %v2922_v45, %v3802_v15  ;;  %v2932_v49 = vpop.f32.mrb[14].mxu1  ;;  %3176 = vmatpush3.bf16.msra.mxu1 %v3175_v25  ;;  %v861_v51 = vpop.f32.mrb[15].mxu0  ;;  %3177 = vmatprep.subr.bf16.mxu0 %v3459_v57 }
 0x130   : > { %v3178_v55 = vpack.c.bf16 %v980_v30, %v979_v41  ;;  %v952_v56 = vadd.f32 %v2932_v49, %v3802_v15  ;;  %v862_v59 = vadd.f32 %v861_v51, %v3794_v60  ;;  %v946_v62 = vpop.f32.mrb[15].mxu1  ;;  %3183 = vmatprep.subr.bf16.mxu1 %v3459_v57 }
 0x131   : > { %v3184_v63 = vpack.c.bf16 %v984_v39, %v983_v61  ;;  %v982_v0 = vmax.f32 %v867_v46, 0.0  ;;  %v947_v1 = vadd.f32 %v946_v62, %v3794_v60  ;;  %2986 = vmatmul.mubr.msk.f32.vlgmr.msra.gmra.mrb[20].mxu0 %vm988_vm2, %v3817_v24 }
 0x132   : > { %v986_v2 = vmax.f32 %v952_v56, 0.0  ;;  %v981_v3 = vmax.f32 %v862_v59, 0.0  ;;  %2997 = vmatmul.mubr.msk.f32.vlgmr.msra.gmra.mrb[20].mxu1 %vm988_vm2, %v3817_v24  ;;  %3179 = vmatpush3.bf16.msra.mxu0 %v3178_v55 }
 0x133   : > { %v985_v7 = vmax.f32 %v947_v1, 0.0  ;;  %3185 = vmatpush3.bf16.msra.mxu1 %v3184_v63  ;;  %3180 = vmatprep.subr.bf16.mxu0 %v3459_v57 }
 0x134   : > { %v3181_v15 = vpack.c.bf16 %v982_v0, %v981_v3  ;;  %3186 = vmatprep.subr.bf16.mxu1 %v3459_v57  ;;  %3007 = vmatprep.mubr.msk.f32.mxu0 %vm3460_vm1, %v3461_v58 }
 0x135   : > { %v3187_v60 = vpack.c.bf16 %v986_v2, %v985_v7  ;;  %3018 = vmatprep.mubr.msk.f32.mxu1 %vm3460_vm1, %v3461_v58 }
 0x136   : > { %3182 = vmatpush3.bf16.msra.mxu0 %v3181_v15 }
 0x137   : > { %3188 = vmatpush3.bf16.msra.mxu1 %v3187_v60  ;;  %3189 = vmatprep.subr.bf16.mxu0 %v3459_v57 }
 0x138   : > { %3197 = vmatprep.subr.bf16.mxu1 %v3459_v57 }
 0x139   : > { %3008 = vmatmul.mubr.msk.f32.vlgmr.msra.gmra.mrb[22].mxu0 %vm988_vm2, %v3817_v24 }
 0x13a   : > { %3019 = vmatmul.mubr.msk.f32.vlgmr.msra.gmra.mrb[22].mxu1 %vm988_vm2, %v3817_v24  ;;  %3029 = vmatprep.mubr.msk.f32.mxu0 %vm3460_vm1, %v3461_v58 }
 0x13b   : > { %3040 = vmatprep.mubr.msk.f32.mxu1 %vm3460_vm1, %v3461_v58 }
 0x13f   : > { %3192 = vmatpush3.bf16.xpose.msk.msra.mxu0 %vm3887_vm3, %v3607_v4 }
 0x140   : > { %3200 = vmatpush3.bf16.xpose.msk.msra.mxu1 %vm3887_vm3, %v3621_v10  ;;  %3193 = vmatprep.subr.bf16.mxu0 %v3459_v57 }
 0x141   : > { %3201 = vmatprep.subr.bf16.mxu1 %v3459_v57 }
 0x147   : > { %3196 = vmatpush3.bf16.xpose.msk.msra.mxu0 %vm3887_vm3, %v3194_v14 }
 0x148   : > { %3204 = vmatpush3.bf16.xpose.msk.msra.mxu1 %vm3887_vm3, %v3202_v19  ;;  %3205 = vmatprep.subr.bf16.mxu0 %v3459_v57 }
 0x149   : > { %3213 = vmatprep.subr.bf16.mxu1 %v3459_v57 }
 0x1f4   : > { %v1058_v4 = vpop.f32.mrb[16].mxu0 }
 0x1f5   : > { %v1128_v10 = vpop.f32.mrb[16].mxu1  ;;  %v2943_v24 = vpop.f32.mrb[17].mxu0  ;;  %v1553_v12 = vsel %vm1552_vm4, %v1058_v4, -inf }
 0x1f6   : > { %v1556_v5 = vsel %vm1552_vm4, %v1128_v10, -inf  ;;  %v2954_v6 = vpop.f32.mrb[17].mxu1  ;;  %1554 = vmax.xlane.f32.xlu0 %v1553_v12 }
 0x1f7   : > { %1557 = vmax.xlane.f32.xlu1 %v1556_v5 }
 0x1fc   : > { %v1198_v14 = vpop.f32.mrb[18].mxu0 }
 0x1fd   : > { %v1559_v8 = vsel %vm1552_vm4, %v1198_v14, -inf  ;;  %v1268_v11 = vpop.f32.mrb[18].mxu1  ;;  %v2965_v19 = vpop.f32.mrb[19].mxu0 }
 0x1fe   : > { %1560 = vmax.xlane.f32.xlu0 %v1559_v8  ;;  %v2976_v13 = vpop.f32.mrb[19].mxu1  ;;  %v1562_v17 = vsel %vm1552_vm4, %v1268_v11, -inf }
 0x202   : > { %1563 = vmax.xlane.f32.xlu0 %v1562_v17 }
 0x204   : > { %v1338_v18 = vpop.f32.mrb[20].mxu0 }
 0x205   : > { %v1408_v22 = vpop.f32.mrb[20].mxu1  ;;  %v1565_v23 = vsel %vm1552_vm4, %v1338_v18, -inf  ;;  %v2987_v25 = vpop.f32.mrb[21].mxu0 }
 0x206   : > { %v1568_v30 = vsel %vm1552_vm4, %v1408_v22, -inf  ;;  %1566 = vmax.xlane.f32.xlu1 %v1565_v23  ;;  %v2998_v38 = vpop.f32.mrb[21].mxu1 }
 0x207   : > { %1569 = vmax.xlane.f32.xlu0 %v1568_v30 }
 0x20c   : > { %v1478_v39 = vpop.f32.mrb[22].mxu0 }
 0x20d   : > { %v1548_v41 = vpop.f32.mrb[22].mxu1  ;;  %v1571_v45 = vsel %vm1552_vm4, %v1478_v39, -inf  ;;  %v3009_v61 = vpop.f32.mrb[23].mxu0 }
 0x20e   : > { %v1574_v46 = vsel %vm1552_vm4, %v1548_v41, -inf  ;;  %1572 = vmax.xlane.f32.xlu1 %v1571_v45  ;;  %v3020_v49 = vpop.f32.mrb[23].mxu1 }
 0x20f   : > { %1575 = vmax.xlane.f32.xlu0 %v1574_v46 }
 0x283   : > { %v1555_v51 = vpop.xlane.xlu0 %1554 }
 0x284   : > { %v1558_v55 = vpop.xlane.xlu1 %1557  ;;  %v1577_v56 = vsub.f32 %v1058_v4, %v1555_v51 }
 0x285   : > { %v1578_v59 = vsub.f32 %v1128_v10, %v1558_v55 }
 0x286   : > { %v1585_v62 = vmul.f32 1.442695, %v1577_v56 }
 0x287   : > { %v1587_v63 = vmul.f32 1.442695, %v1578_v59 }
 0x288   : > { %3309 = vpow2.f32 %v1585_v62 }
 0x289   : > { %3311 = vpow2.f32 %v1587_v63 }
 0x28b   : > { %v1561_v0 = vpop.xlane.xlu0 %1560 }
 0x28c   : > { %v1579_v1 = vsub.f32 %v1198_v14, %v1561_v0 }
 0x28e   : > { %v1589_v2 = vmul.f32 1.442695, %v1579_v1 }
 0x28f   : > { %v1564_v3 = vpop.xlane.xlu0 %1563 }
 0x290   : > { %3313 = vpow2.f32 %v1589_v2  ;;  %v1580_v7 = vsub.f32 %v1268_v11, %v1564_v3 }
 0x292   : > { %v3310_v15 = vpop.eup %3309  ;;  %v1591_v60 = vmul.f32 1.442695, %v1580_v7 }
 0x293   : > { %v3312_v24 = vpop.eup %3311  ;;  %3030 = vmatmul.mubr.msk.f32.vlgmr.msra.gmra.mrb[24].mxu0 %vm262_vm0, %v3310_v15  ;;  %v1567_v12 = vpop.xlane.xlu1 %1566 }
 0x294   : > { %3315 = vpow2.f32 %v1591_v60  ;;  %3041 = vmatmul.mubr.msk.f32.vlgmr.msra.gmra.mrb[24].mxu1 %vm262_vm0, %v3312_v24  ;;  %3208 = vmatpush3.bf16.xpose.msk.msra.mxu0 %vm3887_vm3, %v3647_v20  ;;  %v1570_v4 = vpop.xlane.xlu0 %1569  ;;  %v1581_v10 = vsub.f32 %v1338_v18, %v1567_v12  ;;  %v1604_v5 = vsel %vm1552_vm4, %v3312_v24, 0.0  ;;  %v1601_v20 = vsel %vm1552_vm4, %v3310_v15, 0.0 }
 0x295   : > { %3216 = vmatpush3.bf16.xpose.msk.msra.mxu1 %vm3887_vm3, %v3660_v26  ;;  %v1582_v6 = vsub.f32 %v1408_v22, %v1570_v4  ;;  %1605 = vadd.xlane.f32.xlu1 %v1604_v5 }
 0x296   : > { %v1593_v14 = vmul.f32 1.442695, %v1581_v10  ;;  %3209 = vmatprep.subr.bf16.mxu0 %v3459_v57  ;;  %3217 = vmatprep.subr.bf16.mxu1 %v3459_v57 }
 0x297   : > { %v1595_v8 = vmul.f32 1.442695, %v1582_v6  ;;  %3051 = vmatprep.mubr.msk.f32.mxu0 %vm3460_vm1, %v3461_v58  ;;  %3062 = vmatprep.mubr.msk.f32.mxu1 %vm3460_vm1, %v3461_v58 }
 0x298   : > { %3317 = vpow2.f32 %v1593_v14 }
 0x299   : > { %3319 = vpow2.f32 %v1595_v8  ;;  %1602 = vadd.xlane.f32.xlu1 %v1601_v20 }
 0x29a   : > { %v3314_v26 = vpop.eup %3313 }
 0x29b   : > { %v1573_v11 = vpop.xlane.xlu1 %1572  ;;  %v1607_v19 = vsel %vm1552_vm4, %v3314_v26, 0.0 }
 0x29c   : > { %3212 = vmatpush3.bf16.xpose.msk.msra.mxu0 %vm3887_vm3, %v3210_v31  ;;  %v1576_v13 = vpop.xlane.xlu0 %1575  ;;  %v1583_v17 = vsub.f32 %v1478_v39, %v1573_v11  ;;  %1608 = vadd.xlane.f32.xlu0 %v1607_v19 }
 0x29d   : > { %3220 = vmatpush3.bf16.xpose.msk.msra.mxu1 %vm3887_vm3, %v3218_v35  ;;  %v1584_v18 = vsub.f32 %v1548_v41, %v1576_v13  ;;  %3221 = vmatprep.subr.bf16.mxu0 %v3459_v57 }
 0x29e   : > { %v3316_v22 = vpop.eup %3315  ;;  %v1597_v23 = vmul.f32 1.442695, %v1583_v17  ;;  %3229 = vmatprep.subr.bf16.mxu1 %v3459_v57 }
 0x29f   : > { %v1599_v16 = vmul.f32 1.442695, %v1584_v18  ;;  %v1610_v21 = vsel %vm1552_vm4, %v3316_v22, 0.0 }
 0x2a0   : > { %3321 = vpow2.f32 %v1597_v23  ;;  %1611 = vadd.xlane.f32.xlu0 %v1610_v21 }
 0x2a1   : > { %3323 = vpow2.f32 %v1599_v16 }
 0x2a2   : > { %v3318_v31 = vpop.eup %3317 }
 0x2a3   : > { %v3320_v25 = vpop.eup %3319  ;;  %3052 = vmatmul.mubr.msk.f32.vlgmr.msra.gmra.mrb[26].mxu0 %vm262_vm0, %v3314_v26  ;;  %v1613_v27 = vsel %vm1552_vm4, %v3318_v31, 0.0 }
 0x2a4   : > { %3063 = vmatmul.mubr.msk.f32.vlgmr.msra.gmra.mrb[26].mxu1 %vm262_vm0, %v3316_v22  ;;  %3224 = vmatpush3.bf16.xpose.msk.msra.mxu0 %vm3887_vm3, %v3666_v29  ;;  %v1616_v28 = vsel %vm1552_vm4, %v3320_v25, 0.0 }
 0x2a5   : > { %3232 = vmatpush3.bf16.xpose.msk.msra.mxu1 %vm3887_vm3, %v3676_v34  ;;  %1617 = vadd.xlane.f32.xlu0 %v1616_v28 }
 0x2a6   : > { %1614 = vadd.xlane.f32.xlu1 %v1613_v27  ;;  %3225 = vmatprep.subr.bf16.mxu0 %v3459_v57 }
 0x2a7   : > { %3233 = vmatprep.subr.bf16.mxu1 %v3459_v57  ;;  %3073 = vmatprep.mubr.msk.f32.mxu0 %vm3460_vm1, %v3461_v58 }
 0x2a8   : > { %3084 = vmatprep.mubr.msk.f32.mxu1 %vm3460_vm1, %v3461_v58 }
 0x2aa   : > { %v3322_v35 = vpop.eup %3321 }
 0x2ab   : > { %v3324_v29 = vpop.eup %3323  ;;  %v1619_v30 = vsel %vm1552_vm4, %v3322_v35, 0.0 }
 0x2ac   : > { %3228 = vmatpush3.bf16.xpose.msk.msra.mxu0 %vm3887_vm3, %v3226_v40  ;;  %v1622_v34 = vsel %vm1552_vm4, %v3324_v29, 0.0  ;;  %1620 = vadd.xlane.f32.xlu1 %v1619_v30 }
 0x2ad   : > { %3236 = vmatpush3.bf16.xpose.msk.msra.mxu1 %vm3887_vm3, %v3234_v43  ;;  %1623 = vadd.xlane.f32.xlu0 %v1622_v34 }
 0x2ae   : > { %3237 = vmatprep.subr.bf16.mxu0 %v3459_v57  ;;  %3245 = vmatprep.subr.bf16.mxu1 %v3459_v57 }
 0x2b3   : > { %3074 = vmatmul.mubr.msk.f32.vlgmr.msra.gmra.mrb[28].mxu0 %vm262_vm0, %v3318_v31 }
 0x2b4   : > { %3085 = vmatmul.mubr.msk.f32.vlgmr.msra.gmra.mrb[28].mxu1 %vm262_vm0, %v3320_v25  ;;  %3240 = vmatpush3.bf16.xpose.msk.msra.mxu0 %vm3887_vm3, %v3732_v53 }
 0x2b5   : > { %3248 = vmatpush3.bf16.xpose.msk.msra.mxu1 %vm3887_vm3, %v3736_v54  ;;  %3241 = vmatprep.subr.bf16.mxu0 %v3459_v57 }
 0x2b6   : > { %3249 = vmatprep.subr.bf16.mxu1 %v3459_v57  ;;  %3095 = vmatprep.mubr.msk.f32.mxu0 %vm3460_vm1, %v3461_v58 }
 0x2b7   : > { %3106 = vmatprep.mubr.msk.f32.mxu1 %vm3460_vm1, %v3461_v58 }
 0x2bc   : > { %3244 = vmatpush3.bf16.xpose.msk.msra.mxu0 %vm3887_vm3, %v3242_v50 }
 0x2bd   : > { %3252 = vmatpush3.bf16.xpose.msk.msra.mxu1 %vm3887_vm3, %v3250_v52 }
 0x2c3   : > { %3096 = vmatmul.mubr.msk.f32.vlgmr.msra.gmra.mrb[30].mxu0 %vm262_vm0, %v3322_v35 }
 0x2c4   : > { %3107 = vmatmul.mubr.msk.f32.vlgmr.msra.gmra.mrb[30].mxu1 %vm262_vm0, %v3324_v29 }
 0x322   : > { %v1606_v32 = vpop.xlane.xlu1 %1605 }
 0x323   : > { %3325 = vrcp.f32 %v1606_v32 }
 0x326   : > { %v1603_v33 = vpop.xlane.xlu1 %1602 }
 0x327   : > { %3327 = vrcp.f32 %v1603_v33 }
 0x329   : > { %v1609_v36 = vpop.xlane.xlu0 %1608 }
 0x32a   : > { %3329 = vrcp.f32 %v1609_v36 }
 0x32d   : > { %v3326_v40 = vpop.eup %3325  ;;  %v1612_v48 = vpop.xlane.xlu0 %1611 }
 0x32e   : > { %3331 = vrcp.f32 %v1612_v48 }
 0x331   : > { %v3328_v47 = vpop.eup %3327 }
 0x332   : > { %v1618_v51 = vpop.xlane.xlu0 %1617 }
 0x333   : > { %v1615_v46 = vpop.xlane.xlu1 %1614 }
 0x334   : > { %v3330_v57 = vpop.eup %3329  ;;  %3333 = vrcp.f32 %v1615_v46 }
 0x335   : > { %3335 = vrcp.f32 %v1618_v51 }
 0x338   : > { %v3332_v9 = vpop.eup %3331 }
 0x339   : > { %v1621_v7 = vpop.xlane.xlu1 %1620 }
 0x33a   : > { %v1624_v60 = vpop.xlane.xlu0 %1623  ;;  %3337 = vrcp.f32 %v1621_v7 }
 0x33b   : > { %3339 = vrcp.f32 %v1624_v60 }
 0x33e   : > { %v3334_v56 = vpop.eup %3333 }
 0x33f   : > { %v3336_v62 = vpop.eup %3335 }
 0x344   : > { %v3338_v20 = vpop.eup %3337 }
 0x345   : > { %v3340_v17 = vpop.eup %3339 }
 0x366   : > { %v1730_v37 = vpop.f32.mrb[24].mxu0 }
 0x367   : > { %v1815_v42 = vpop.f32.mrb[24].mxu1  ;;  %v3031_v43 = vpop.f32.mrb[25].mxu0  ;;  %v4007_v53 = vmul.f32 %v3328_v47, %v1730_v37 }
 0x368   : > { %v4005_v44 = vmul.f32 %v3326_v40, %v1815_v42  ;;  %v3042_v50 = vpop.f32.mrb[25].mxu1 }
 0x369   : > { %v2337_v54 = vmul.f32 %v4007_v53, %v4007_v53 }
 0x36a   : > { %v2338_v52 = vmul.f32 %v4005_v44, %v4005_v44  ;;  %v2465_v12 = vrot.slane %v4005_v44, 7 }
 0x36c   : > { %2355 = vrot.lane.b32.xlu1 %v2338_v52, %s3462_s10  ;;  %v2467_v10 = vsel %vm2466_vm5, %v2465_v12, %v4007_v53  ;;  %v2513_v8 = vsel %vm2469_vm6, %v2465_v12, %v4007_v53 }
 0x370   : > { %2353 = vrot.lane.b32.xlu1 %v2337_v54, %s3462_s10 }
 0x376   : > { %v1900_v58 = vpop.f32.mrb[26].mxu0 }
 0x377   : > { %v4015_v38 = vmul.f32 %v3330_v57, %v1900_v58  ;;  %v1985_v39 = vpop.f32.mrb[26].mxu1  ;;  %v3053_v41 = vpop.f32.mrb[27].mxu0 }
 0x378   : > { %v4017_v45 = vmul.f32 %v3332_v9, %v1985_v39  ;;  %v3064_v61 = vpop.f32.mrb[27].mxu1 }
 0x379   : > { %v2339_v49 = vmul.f32 %v4015_v38, %v4015_v38  ;;  %v2468_v4 = vrot.slane %v4015_v38, 6 }
 0x37a   : > { %v2340_v55 = vmul.f32 %v4017_v45, %v4017_v45  ;;  %v2471_v5 = vrot.slane %v4017_v45, 5 }
 0x37b   : > { %2357 = vrot.lane.b32.xlu0 %v2339_v49, %s3462_s10  ;;  %v2470_v6 = vsel %vm2469_vm6, %v2468_v4, %v2467_v10  ;;  %v2514_v26 = vsel %vm2472_vm7, %v2468_v4, %v2513_v8 }
 0x37c   : > { %2359 = vrot.lane.b32.xlu1 %v2340_v55, %s3462_s10  ;;  %v2473_v11 = vsel %vm2472_vm7, %v2471_v5, %v2470_v6  ;;  %v2515_v28 = vsel %vm2475_vm8, %v2471_v5, %v2514_v26 }
 0x386   : > { %v2070_v59 = vpop.f32.mrb[28].mxu0 }
 0x387   : > { %v4025_v63 = vmul.f32 %v3334_v56, %v2070_v59  ;;  %v2155_v0 = vpop.f32.mrb[28].mxu1  ;;  %v3075_v1 = vpop.f32.mrb[29].mxu0 }
 0x388   : > { %v4027_v2 = vmul.f32 %v3336_v62, %v2155_v0  ;;  %v3086_v3 = vpop.f32.mrb[29].mxu1 }
 0x389   : > { %v2341_v15 = vmul.f32 %v4025_v63, %v4025_v63  ;;  %v2474_v14 = vrot.slane %v4025_v63, 4 }
 0x38a   : > { %v2342_v24 = vmul.f32 %v4027_v2, %v4027_v2  ;;  %v2477_v19 = vrot.slane %v4027_v2, 3 }
 0x38b   : > { %2361 = vrot.lane.b32.xlu0 %v2341_v15, %s3462_s10  ;;  %v2476_v18 = vsel %vm2475_vm8, %v2474_v14, %v2473_v11  ;;  %v2516_v34 = vsel %vm2478_vm9, %v2474_v14, %v2515_v28 }
 0x38c   : > { %2363 = vrot.lane.b32.xlu1 %v2342_v24, %s3462_s10  ;;  %v2479_v35 = vsel %vm2478_vm9, %v2477_v19, %v2476_v18  ;;  %v2517_v36 = vsel %vm2481_vm10, %v2477_v19, %v2516_v34 }
 0x396   : > { %v2240_v13 = vpop.f32.mrb[30].mxu0 }
 0x397   : > { %v4048_v22 = vmul.f32 %v3338_v20, %v2240_v13  ;;  %v2325_v23 = vpop.f32.mrb[30].mxu1  ;;  %v3097_v16 = vpop.f32.mrb[31].mxu0 }
 0x398   : > { %v4051_v21 = vmul.f32 %v3340_v17, %v2325_v23  ;;  %v3108_v31 = vpop.f32.mrb[31].mxu1 }
 0x399   : > { %v2480_v25 = vrot.slane %v4048_v22, 2  ;;  %v2343_v27 = vmul.f32 %v4048_v22, %v4048_v22 }
 0x39a   : > { %v2344_v29 = vmul.f32 %v4051_v21, %v4051_v21  ;;  %v2483_v30 = vrot.slane %v4051_v21, 1 }
 0x39b   : > { %2365 = vrot.lane.b32.xlu0 %v2343_v27, %s3462_s10  ;;  %v2482_v32 = vsel %vm2481_vm10, %v2480_v25, %v2479_v35  ;;  %v2518_v37 = vsel %vm2484_vm11, %v2480_v25, %v2517_v36 }
 0x39c   : > { %2367 = vrot.lane.b32.xlu1 %v2344_v29, %s3462_s10  ;;  %v2485_v33 = vsel %vm2484_vm11, %v2483_v30, %v2482_v32 }
 0x39d   : > { %2487 = vst.msk [vmem:[%s4066_s12] sm:$0xff] %vm262_vm0, %v2485_v33 }
 0x39f   : > { %2519 = vrot.lane.b32.xlu0 %v2518_v37, %s3463_s23 }
 0x3a0   : > { %2521 = vrot.lane.b32.xlu1 %v2483_v30, %s3463_s23 }
 0x3de   : > { %v2356_v40 = vpop.permute.xlu1 %2355 }
 0x3df   : > { %v2378_v48 = vsub.f32 %v4005_v44, %v2356_v40 }
 0x3e1   : > { %v2386_v58 = vmax.f32 %v2378_v48, 0.0 }
 0x3e2   : > { %v2354_v42 = vpop.permute.xlu1 %2353 }
 0x3e3   : > { %v2377_v52 = vsub.f32 %v4007_v53, %v2354_v42  ;;  %v2394_v61 = vadd.f32 1e-05, %v2386_v58 }
 0x3e5   : > { %v2385_v9 = vmax.f32 %v2377_v52, 0.0  ;;  %vm2410_vm12 = vcmp.eq.f32.partialorder %v2394_v61, inf  ;;  %vm2412_vm14 = vcmp.eq.f32.partialorder %v2394_v61, 0.0  ;;  %v2413_v6 = vand.u32 2147483648, %v2394_v61 }
 0x3e7   : > { %v2393_v49 = vadd.f32 1e-05, %v2385_v9 }
 0x3e9   : > { %vm2403_vm15 = vcmp.eq.f32.partialorder %v2393_v49, inf  ;;  %v2406_v16 = vand.u32 2147483648, %v2393_v49  ;;  %vm2405_vm2 = vcmp.eq.f32.partialorder %v2393_v49, 0.0 }
 0x3ed   : > { %v2358_v43 = vpop.permute.xlu0 %2357 }
 0x3ee   : > { %v2360_v50 = vpop.permute.xlu1 %2359  ;;  %v2379_v47 = vsub.f32 %v4015_v38, %v2358_v43 }
 0x3ef   : > { %v2380_v54 = vsub.f32 %v4017_v45, %v2360_v50 }
 0x3f0   : > { %v2387_v57 = vmax.f32 %v2379_v47, 0.0 }
 0x3f1   : > { %v2388_v39 = vmax.f32 %v2380_v54, 0.0 }
 0x3f2   : > { %v2395_v41 = vadd.f32 1e-05, %v2387_v57 }
 0x3f3   : > { %v2396_v56 = vadd.f32 1e-05, %v2388_v39 }
 0x3f4   : > { %3341 = vrsqrt.f32 %v2395_v41  ;;  %vm2417_vm13 = vcmp.eq.f32.partialorder %v2395_v41, inf  ;;  %v2420_v26 = vand.u32 2147483648, %v2395_v41  ;;  %vm2419_vm0 = vcmp.eq.f32.partialorder %v2395_v41, 0.0 }
 0x3f5   : > { %3343 = vrsqrt.f32 %v2394_v61  ;;  %vm2424_vm1 = vcmp.eq.f32.partialorder %v2396_v56, inf  ;;  %v2427_v31 = vand.u32 2147483648, %v2396_v56  ;;  %vm2426_vm3 = vcmp.eq.f32.partialorder %v2396_v56, 0.0 }
 0x3f6   : > { %3345 = vrsqrt.f32 %v2393_v49 }
 0x3f7   : > { %3347 = vrsqrt.f32 %v2396_v56 }
 0x3fd   : > { %v2362_v46 = vpop.permute.xlu0 %2361 }
 0x3fe   : > { %v2364_v51 = vpop.permute.xlu1 %2363  ;;  %v2381_v55 = vsub.f32 %v4025_v63, %v2362_v46  ;;  %v3342_v62 = vpop.eup %3341 }
 0x3ff   : > { %v2382_v38 = vsub.f32 %v4027_v2, %v2364_v51  ;;  %v3344_v0 = vpop.eup %3343  ;;  %v2416_v63 = vmul.f32 %v3342_v62, %v2395_v41 }
 0x400   : > { %v2389_v44 = vmax.f32 %v2381_v55, 0.0  ;;  %v3346_v1 = vpop.eup %3345  ;;  %v2409_v15 = vmul.f32 %v3344_v0, %v2394_v61 }
 0x401   : > { %v2390_v53 = vmax.f32 %v2382_v38, 0.0  ;;  %v3348_v3 = vpop.eup %3347  ;;  %v2402_v4 = vmul.f32 %v3346_v1, %v2393_v49  ;;  %v2418_v8 = vsel %vm2417_vm13, %v2395_v41, %v2416_v63 }
 0x402   : > { %v2397_v45 = vadd.f32 1e-05, %v2389_v44  ;;  %v2423_v10 = vmul.f32 %v3348_v3, %v2396_v56  ;;  %v2411_v20 = vsel %vm2410_vm12, %v2394_v61, %v2409_v15 }
 0x403   : > { %v4080_v59 = vadd.f32 1e-05, %v2390_v53  ;;  %v2404_v18 = vsel %vm2403_vm15, %v2393_v49, %v2402_v4 }
 0x404   : > { %3349 = vrsqrt.f32 %v2397_v45  ;;  %v2425_v23 = vsel %vm2424_vm1, %v2396_v56, %v2423_v10  ;;  %vm2431_vm4 = vcmp.eq.f32.partialorder %v2397_v45, inf  ;;  %v2407_v27 = vsel %vm2405_vm2, %v2406_v16, %v2404_v18 }
 0x405   : > { %3351 = vrsqrt.f32 %v4080_v59  ;;  %v2428_v28 = vsel %vm2426_vm3, %v2427_v31, %v2425_v23  ;;  %v2434_v30 = vand.u32 2147483648, %v2397_v45  ;;  %vm2433_vm12 = vcmp.eq.f32.partialorder %v2397_v45, 0.0 }
 0x406   : > { %vm2438_vm13 = vcmp.eq.f32.partialorder %v4080_v59, inf  ;;  %v2500_v37 = vrot.slane %v2428_v28, 5  ;;  %v2441_v40 = vand.u32 2147483648, %v4080_v59  ;;  %vm2525_vm1 = vcmask 392449  }
 0x40d   : > { %v2366_v7 = vpop.permute.xlu0 %2365 }
 0x40e   : > { %v2368_v2 = vpop.permute.xlu1 %2367  ;;  %v2383_v60 = vsub.f32 %v4048_v22, %v2366_v7  ;;  %v3350_v12 = vpop.eup %3349  ;;  %v2421_v22 = vsel %vm2419_vm0, %v2420_v26, %v2418_v8 }
 0x40f   : > { %v2384_v24 = vsub.f32 %v4051_v21, %v2368_v2  ;;  %v3352_v19 = vpop.eup %3351  ;;  %v2430_v17 = vmul.f32 %v3350_v12, %v2397_v45  ;;  %v2414_v21 = vsel %vm2412_vm14, %v2413_v6, %v2411_v20  ;;  %v2498_v29 = vrot.slane %v2421_v22, 6 }
 0x410   : > { %v2391_v5 = vmax.f32 %v2383_v60, 0.0  ;;  %v2437_v25 = vmul.f32 %v3352_v19, %v4080_v59  ;;  %v2496_v34 = vrot.slane %v2414_v21, 7  ;;  %vm2440_vm14 = vcmp.eq.f32.partialorder %v4080_v59, 0.0 }
 0x411   : > { %v2392_v14 = vmax.f32 %v2384_v24, 0.0  ;;  %v2432_v35 = vsel %vm2431_vm4, %v2397_v45, %v2430_v17  ;;  %v2520_v7 = vpop.permute.xlu0 %2519 }
 0x412   : > { %v2399_v11 = vadd.f32 1e-05, %v2391_v5  ;;  %v2435_v32 = vsel %vm2433_vm12, %v2434_v30, %v2432_v35  ;;  %v2439_v33 = vsel %vm2438_vm13, %v4080_v59, %v2437_v25  ;;  %v2497_v36 = vsel %vm2466_vm5, %v2496_v34, %v2407_v27  ;;  %v2522_v63 = vpop.permute.xlu1 %2521 }
 0x413   : > { %v2400_v13 = vadd.f32 1e-05, %v2392_v14  ;;  %v2499_v42 = vsel %vm2469_vm6, %v2498_v29, %v2497_v36  ;;  %v2529_v43 = vsel %vm2469_vm6, %v2496_v34, %v2407_v27  ;;  %v2442_v47 = vsel %vm2440_vm14, %v2441_v40, %v2439_v33 }
 0x414   : > { %3353 = vrsqrt.f32 %v2399_v11  ;;  %v2530_v50 = vsel %vm2472_vm7, %v2498_v29, %v2529_v43  ;;  %v2502_v48 = vrot.slane %v2435_v32, 4  ;;  %v2501_v54 = vsel %vm2472_vm7, %v2500_v37, %v2499_v42 }
 0x415   : > { %3355 = vrsqrt.f32 %v2400_v13  ;;  %vm2445_vm15 = vcmp.eq.f32.partialorder %v2399_v11, inf  ;;  %vm2447_vm5 = vcmp.eq.f32.partialorder %v2399_v11, 0.0  ;;  %v2531_v9 = vsel %vm2475_vm8, %v2500_v37, %v2530_v50 }
 0x416   : > { %vm2452_vm0 = vcmp.eq.f32.partialorder %v2400_v13, inf  ;;  %v2448_v41 = vand.u32 2147483648, %v2399_v11  ;;  %v2504_v61 = vrot.slane %v2442_v47, 3  ;;  %v2455_v46 = vand.u32 2147483648, %v2400_v13 }
 0x417   : > { %v2503_v51 = vsel %vm2475_vm8, %v2502_v48, %v2501_v54  ;;  %v2532_v55 = vsel %vm2478_vm9, %v2502_v48, %v2531_v9  ;;  %vm2454_vm6 = vcmp.eq.f32.partialorder %v2400_v13, 0.0  ;;  %vm2511_vm7 = vcmask 261248  }
 0x418   : > { %v2505_v59 = vsel %vm2478_vm9, %v2504_v61, %v2503_v51  ;;  %v2533_v62 = vsel %vm2481_vm10, %v2504_v61, %v2532_v55  ;;  %vm2527_vm8 = vcmask 385280   ;;  %vm2543_vm9 = vcmask 516480  }
 0x41e   : > { %v3354_v52 = vpop.eup %3353 }
 0x41f   : > { %v3356_v57 = vpop.eup %3355  ;;  %v2444_v58 = vmul.f32 %v3354_v52, %v2399_v11 }
 0x420   : > { %v2451_v39 = vmul.f32 %v3356_v57, %v2400_v13 }
 0x421   : > { %v2446_v49 = vsel %vm2445_vm15, %v2399_v11, %v2444_v58 }
 0x422   : > { %v2453_v56 = vsel %vm2452_vm0, %v2400_v13, %v2451_v39  ;;  %v2449_v38 = vsel %vm2447_vm5, %v2448_v41, %v2446_v49 }
 0x423   : > { %v2456_v44 = vsel %vm2454_vm6, %v2455_v46, %v2453_v56  ;;  %v2506_v53 = vrot.slane %v2449_v38, 2 }
 0x424   : > { %v2508_v45 = vrot.slane %v2456_v44, 1 }
 0x425   : > { %v2534_v0 = vsel %vm2484_vm11, %v2506_v53, %v2533_v62  ;;  %v2507_v1 = vsel %vm2481_vm10, %v2506_v53, %v2505_v59  ;;  %vm2541_vm10 = vcmask 523649  }
 0x426   : > { %2537 = vrot.lane.b32.xlu1 %v2508_v45, %s3463_s23  ;;  %2535 = vrot.lane.b32.xlu0 %v2534_v0, %s3463_s23  ;;  %v2509_v3 = vsel %vm2484_vm11, %v2508_v45, %v2507_v1 }
 0x427   : > { %2512 = vst.msk [vmem:[%s4066_s12] sm:$0xff] %vm2511_vm7, %v2509_v3 }
 0x428   : > { %2528 = vst.msk [vmem:[%s4066_s12 + $0x7] sm:$0x1] %vm2527_vm8, %v2522_v63 }
 0x429   : > { %2526 = vst.msk [vmem:[%s4066_s12 - $0x1] sm:$0xfe] %vm2525_vm1, %v2520_v7 }
 0x498   : > { %v2538_v15 = vpop.permute.xlu1 %2537  ;;  %v2536_v2 = vpop.permute.xlu0 %2535 }
 0x499   : > { %2544 = vst.msk [vmem:[%s4066_s12 + $0x7] sm:$0x1] %vm2543_vm9, %v2538_v15 }
 0x49a   : > { %2542 = vst.msk [vmem:[%s4066_s12 - $0x1] sm:$0xfe] %vm2541_vm10, %v2536_v2 }
 0x49b   : > { %3400 = shalt.err (!%p3397_p2)
}
 0x49c   : > { %s3401_s13 = scalar_lea.hbm %s4114_s6, 128  ;;  %s3405_s8 = scalar_lea.hbm %s4164_s4, 256 }
 0x49d   : > { %p3402_p4 = scmp.ne.s32.totalorder %s4114_s6, %s3401_s13  ;;  %p3406_p9 = scmp.lt.u32.totalorder %s4114_s6, %s4164_s4 }
 0x49e   : > { %p3407_p1 = scmp.lt.u32.totalorder %s3405_s8, %s3401_s13  ;;  %p3409_p6 = scmp.lt.u32.totalorder %s3401_s13, %s4114_s6 }
 0x49f   : > { %p3403_p5 = pnand %p3402_p4, %p4173_p11 }
 0x4a0   : > { %p3408_p3 = por %p3407_p1, %p3406_p9 }
 0x4a1   : > { %p3404_p7 = pneg %p3403_p5 }
 0x4a2   : > { %p3410_p12 = por %p3409_p6, %p3408_p3 }
 0x4a4   : > { %p3411_p13 = pnand %p3410_p12, %p3404_p7 }
 0x4a6   : > { %3414 = shalt.err (!%p3411_p13)
}
 0x4a7   : > { %3255 = dma.vmem_to_hbm [thread:$0]  (%p4173_p11), %s4116_s29, 128, %s4114_s6, %s2546_s7  }
 0x4a8 PF: > { %s2571_s12 = sand.u32 1, %s3441_s15   ;;  %p4174_p8 = scmp.ne.s32.totalorder %s4169_s28, 0 }
 0x4a9   : > { %p4175_p10 = scmp.ge.s32.totalorder %s3453_s18, 2  ;;  %s2572_s23 = scalar_lea.sflag [#allocation4], %s2571_s12 }
 0x4ab   : > { %p3262_p0 = pnand %p4175_p10, %p4174_p8 }
 0x4ad   : > { %3436 = dma.done.wait (!%p3262_p0), %s2572_s23, 128  }
 0x4ae   : > { %3438 = vsyncadd (!%p3262_p0), %s2572_s23, 4294967168  ;;  %p17_p2 = scmp.ge.s32.totalorder %s3515_s21, 4   ;;  %s4176_s15 = smov %s3445_s16 }
 0x4af   : > { %s4177_s16 = smov %s3449_s17  ;;  %s4178_s17 = smov %s3527_s24 }
 0x4b0   : > { %s4179_s18 = smov %s3515_s21  ;;  %19 = sbr.rel (!%p17_p2) target bundleno = 5 (0x5), region = 81 }
 0x4b7   :  { %2577 = vsyncpa [#allocation3], 1 }
 0x4b8   :  { %2579 = vsyncpa [#allocation3 + $0x1], 1 }
 0x4b9   :  { %2580 = vsyncpa [#allocation4], 1 }
 0x4ba   :  { %2582 = vsyncpa [#allocation4 + $0x1], 1 }

</bundles_post_ra>
